<compile_context>
chip_gen: v5e
topology: v5e:2x2
jax: 0.10.0
libtpu: 0.0.40
codegen_flags: <defaults>
</compile_context>

<pallas_src>
import jax
import jax.numpy as jnp
from jax.experimental import pallas as pl
from jax.experimental.pallas import tpu as pltpu


def linear_kernel(w_ref, x_ref, o_ref):
    # w_ref: SMEM scalar (shape (1,)); x_ref/o_ref: VMEM (1, batch), lane-dense.
    # y = x * W[0, 0]   (== x @ W.T for a (1,1) weight)
    o_ref[...] = x_ref[...] * w_ref[0]


def linear_no_bias(x, w):
    """Pallas equivalent of nn.Linear(1, 1, bias=False): y = x @ w.T."""
    batch, in_f = x.shape
    out_f, _ = w.shape
    assert in_f == 1 and out_f == 1

    # Layout plumbing in the wrapper (not in the kernel): put batch on lanes.
    x_row = x.reshape(1, batch)   # (1, batch): lane-dense load/store
    w_flat = w.reshape(1)         # 1-D scalar for SMEM (avoids 2-D SMEM padding)

    y_row = pl.pallas_call(
        linear_kernel,
        out_shape=jax.ShapeDtypeStruct((1, batch), x.dtype),
        in_specs=[
            pl.BlockSpec(memory_space=pltpu.MemorySpace.SMEM),  # scalar weight
            pl.BlockSpec(memory_space=pltpu.MemorySpace.VMEM),  # whole x block
        ],
        out_specs=pl.BlockSpec(memory_space=pltpu.MemorySpace.VMEM),
    )(w_flat, x_row)

    return y_row.reshape(batch, out_f)


if __name__ == "__main__":
    key = jax.random.PRNGKey(0)
    k_x, k_w = jax.random.split(key)

    batch = 8
    x = jax.random.normal(k_x, (batch, 1), dtype=jnp.float32)
    # Weight shape (out_features=1, in_features=1); uniform(-1, 1) mimics
    # PyTorch's default init bound for fan_in=1.
    w = jax.random.uniform(k_w, (1, 1), dtype=jnp.float32, minval=-1.0, maxval=1.0)

    y = linear_no_bias(x, w)
    jax.block_until_ready(y)

    # Reference check against plain JAX matmul (same semantics as nn.Linear).
    y_ref = x @ w.T
    assert y.shape == (batch, 1)
    assert jnp.allclose(y, y_ref, atol=1e-6, rtol=1e-6)

    print("KERNEL_OK")
</pallas_src>

<mosaic_0001>
module attributes {stable_mosaic.version = 11 : i64} {
  func.func @linear_kernel(%arg0: memref<1xf32, #tpu.memory_space<smem>>, %arg1: memref<1x8xf32, #tpu.memory_space<vmem>>, %arg2: memref<1x8xf32, #tpu.memory_space<vmem>>) attributes {dimension_semantics = [], scalar_prefetch = 0 : i64, scratch_operands = 0 : i64, tpu.core_type = #tpu.core_type<tc>} {
    %c0 = arith.constant 0 : index
    %c0_0 = arith.constant 0 : index
    %0 = vector.load %arg1[%c0, %c0_0] : memref<1x8xf32, #tpu.memory_space<vmem>>, vector<1x8xf32>
    %c0_1 = arith.constant 0 : index
    %1 = memref.load %arg0[%c0_1] : memref<1xf32, #tpu.memory_space<smem>>
    %2 = vector.broadcast %1 : f32 to vector<1x8xf32>
    %3 = arith.mulf %0, %2 : vector<1x8xf32>
    %c0_2 = arith.constant 0 : index
    %c0_3 = arith.constant 0 : index
    %4 = vector.load %arg2[%c0_2, %c0_3] : memref<1x8xf32, #tpu.memory_space<vmem>>, vector<1x8xf32>
    tpu.vector_store %arg2[%c0_2, %c0_3], %3 {strides = array<i32>} : memref<1x8xf32, #tpu.memory_space<vmem>>, vector<1x8xf32>,
    return
  }
}

</mosaic_0001>

<bundles_post_ra>
// kernel: tpu_custom_call.1
= control target key start
LH: loop header
LB: loop body
LE: loop exit
PB: predicated region body
PF: predicated region fallthrough
CT: control target
= control target key end

     0   :  { %vm17_vm0 = vcmask 57344   ;;  %s87_s0 = inlined_call_operand.<no memory space> [shape: f32[1], index: 0, kind: input, shape index: {}]   ;;  %s88_s1 = inlined_call_operand.vmem [shape: f32[1,8], index: 1, kind: input, shape index: {}]   ;;  %s89_s2 = inlined_call_operand.hbm [shape: f32[1,8], index: 2, kind: output, shape index: {}]  }
   0x1   :  { %v13_v0 = vld [vmem:[%s88_s1] sm:$0x1]  ;;  %v15_v1 = vstv %s87_s0 }
   0x2   :  { %8 = vsyncpa [#allocation4], 0  ;;  %v16_v2 = vmul.f32 %v15_v1, %v13_v0  ;;  %s62_s13 = smov [#allocation3]   ;;  %s26_s17 = sshll.u32 %s89_s2, 4  ;;  %s27_s17 = int_to_ptr.hbm [resolvable:$true] %s26_s17 }
   0x3   :  { %s24_s14 = sshll.u32 %s62_s13, 4  ;;  %s25_s14 = int_to_ptr.vmem [resolvable:$true] %s24_s14 }
   0x4   :  { %18 = vst.msk [vmem:[#allocation3] sm:$0x1] %vm17_vm0, %v16_v2 }
   0x5   :  { %29 = dma.vmem_to_hbm [thread:$0]  %s25_s14, 16, %s27_s17, [#allocation4]  }
   0x6   :  { %60 = dma.done.wait [#allocation4], 16  }
   0x7   :  { %61 = vsyncadd [#allocation4], 4294967280 }
   0x8   :  { %34 = vsyncpa [#allocation4], 1 }

</bundles_post_ra>
